<compile_context>
chip_gen: v7x
topology: tpu7x:2x2x1
jax: 0.10.0
libtpu: 0.0.40
codegen_flags: <defaults>
</compile_context>

<pallas_src>
import jax
import jax.numpy as jnp
from jax.experimental import pallas as pl
from jax.experimental.pallas import tpu as pltpu

# Target bytes for one x block.  Double-buffered x + out + weight at this size
# stays well under v5e's 16 MiB scoped-VMEM default (and v7x's 32 MiB).
_BLOCK_BYTES_TARGET = 2 * 1024 * 1024


def _cra_kernel(x_ref, w_ref, b_ref, o_ref):
    # x_ref/o_ref: (BN, CT, HW) in the model dtype; w_ref: (CT, HW) f32;
    # b_ref: (CT, 1) f32.  w/b blocks are batch-invariant (VMEM-resident).
    x = x_ref[...].astype(jnp.float32)                      # f32 accumulate
    w = w_ref[...]                                          # (CT, HW)
    logit = jnp.sum(x * w[None, :, :], axis=-1, keepdims=True) \
        + b_ref[...][None, :, :]                            # (BN, CT, 1)
    gate = jax.nn.sigmoid(logit)
    o_ref[...] = (x * gate).astype(o_ref.dtype)


def _pick_ch_tile(C, HW, itemsize):
    """Largest channel tile (divisor of C, multiple of 8 if < C) within budget."""
    max_rows = max(8, _BLOCK_BYTES_TARGET // (HW * itemsize))
    if C <= max_rows:
        return C
    t = (max_rows // 8) * 8
    while t >= 8:
        if C % t == 0:
            return t
        t -= 8
    # No suitable divisor; a block equal to the full dim is always legal.
    return C


def _pick_batch_tile(N, C, ch_tile, HW, itemsize):
    """Batch entries per block; divisor of N, keeps >=2 grid steps when N>1."""
    if ch_tile < C:
        return 1  # already channel-tiled; fine-grained batch keeps cores busy
    max_rows = max(1, _BLOCK_BYTES_TARGET // (ch_tile * HW * itemsize))
    best = 1
    for d in range(1, N + 1):
        if N % d == 0 and d <= max_rows and (N // d >= 2 or N == 1):
            best = d
    return best


def cra_forward(x, weight, bias, pooling_size=4):
    """x: (N, C, H, W); weight: (C, 1, P, P); bias: (C,)."""
    N, C, H, W = x.shape
    P = pooling_size
    assert H % P == 0 and W % P == 0, "adaptive pool assumed uniform (H,W divisible by P)"
    bh, bw = H // P, W // P
    HW = H * W
    itemsize = jnp.dtype(x.dtype).itemsize

    # Parameter glue (tiny, f32): expand the PxP depthwise kernel over the
    # pooling blocks and fold in the avg-pool divisor so
    #   conv(avg_pool(x))[n,c] == sum_{h,w} x[n,c,h,w] * w_exp[c,h,w] + bias[c]
    w2 = weight.reshape(C, P, P).astype(jnp.float32) / float(bh * bw)
    w_exp = jnp.repeat(jnp.repeat(w2, bh, axis=1), bw, axis=2).reshape(C, HW)  # (C, HW)
    b2 = bias.reshape(C, 1).astype(jnp.float32)                                # (C, 1)

    # Free reshape; keep the model dtype (bf16 stays bf16 -> half the HBM traffic).
    xf = x.reshape(N, C, HW)

    ch_tile = _pick_ch_tile(C, HW, itemsize)
    bn = _pick_batch_tile(N, C, ch_tile, HW, itemsize)
    grid = (C // ch_tile, N // bn)  # batch innermost -> weight/bias DMA'd once per channel tile

    cost = pl.CostEstimate(
        flops=3 * N * C * HW,
        transcendentals=N * C,
        bytes_accessed=2 * N * C * HW * itemsize + C * HW * 4 + C * 4,
    )

    out = pl.pallas_call(
        _cra_kernel,
        out_shape=jax.ShapeDtypeStruct((N, C, HW), x.dtype),
        grid_spec=pltpu.PrefetchScalarGridSpec(
            num_scalar_prefetch=0,
            grid=grid,
            in_specs=[
                pl.BlockSpec((bn, ch_tile, HW), lambda c, n: (n, c, 0)),
                pl.BlockSpec((ch_tile, HW), lambda c, n: (c, 0)),   # batch-invariant
                pl.BlockSpec((ch_tile, 1), lambda c, n: (c, 0)),    # batch-invariant
            ],
            out_specs=pl.BlockSpec((bn, ch_tile, HW), lambda c, n: (n, c, 0)),
        ),
        compiler_params=pltpu.CompilerParams(
            dimension_semantics=("parallel", "parallel")),
        cost_estimate=cost,
    )(xf, w_exp, b2)

    return out.reshape(N, C, H, W)


def cra_reference(x, weight, bias, pooling_size=4):
    """Pure-JAX reference matching the PyTorch module exactly (f32 math)."""
    N, C, H, W = x.shape
    P = pooling_size
    bh, bw = H // P, W // P
    xf = x.astype(jnp.float32)
    pooled = xf.reshape(N, C, P, bh, P, bw).mean(axis=(3, 5))         # (N,C,P,P)
    logit = jnp.einsum("ncij,cij->nc", pooled,
                       weight.reshape(C, P, P).astype(jnp.float32)) + bias.astype(jnp.float32)
    gate = jax.nn.sigmoid(logit)[:, :, None, None]                    # (N,C,1,1)
    return xf * gate


if __name__ == "__main__":
    key = jax.random.PRNGKey(0)
    k1, k2, k3 = jax.random.split(key, 3)

    N, C, H, W, P = 2, 4, 16, 16, 4
    x = jax.random.normal(k1, (N, C, H, W), dtype=jnp.float32)
    # Deterministic synthetic parameters (shapes from nn.Conv2d(C, C, P, groups=C)).
    weight = jax.random.normal(k2, (C, 1, P, P), dtype=jnp.float32) * 0.25
    bias = jax.random.normal(k3, (C,), dtype=jnp.float32) * 0.1

    # f32 path
    out = cra_forward(x, weight, bias, P)
    jax.block_until_ready(out)
    ref = cra_reference(x, weight, bias, P)
    assert out.shape == x.shape and out.dtype == x.dtype
    assert jnp.allclose(out, ref, atol=1e-5, rtol=1e-5), "f32 mismatch vs reference"

    # bf16 I/O path (kernel accumulates in f32; output cast back to bf16)
    x_bf16 = x.astype(jnp.bfloat16)
    out_bf = cra_forward(x_bf16, weight, bias, P)
    jax.block_until_ready(out_bf)
    ref_bf = cra_reference(x_bf16, weight, bias, P)  # f32 math from bf16 inputs
    assert out_bf.dtype == jnp.bfloat16
    assert jnp.allclose(out_bf.astype(jnp.float32), ref_bf, atol=5e-2, rtol=5e-2), \
        "bf16 mismatch vs reference"

    print("KERNEL_OK")
</pallas_src>

<mosaic_0001>
module attributes {stable_mosaic.version = 11 : i64} {
  func.func @_cra_kernel(%arg0: i32, %arg1: i32, %arg2: memref<1x4x256xf32, #tpu.memory_space<vmem>>, %arg3: memref<4x256xf32, #tpu.memory_space<vmem>>, %arg4: memref<4x1xf32, #tpu.memory_space<vmem>>, %arg5: memref<1x4x256xf32, #tpu.memory_space<vmem>>) attributes {dimension_semantics = [#tpu.dimension_semantics<parallel>, #tpu.dimension_semantics<parallel>], iteration_bounds = array<i64: 1, 2>, scalar_prefetch = 0 : i64, scratch_operands = 0 : i64, tpu.core_type = #tpu.core_type<tc>, window_params = [{transform_indices = @transform_0, window_bounds = array<i64: 1, 4, 256>}, {transform_indices = @transform_1, window_bounds = array<i64: 4, 256>}, {transform_indices = @transform_2, window_bounds = array<i64: 4, 1>}, {transform_indices = @transform_3, window_bounds = array<i64: 1, 4, 256>}]} {
    %c0 = arith.constant 0 : index
    %c0_0 = arith.constant 0 : index
    %c0_1 = arith.constant 0 : index
    %0 = vector.load %arg2[%c0, %c0_0, %c0_1] : memref<1x4x256xf32, #tpu.memory_space<vmem>>, vector<1x4x256xf32>
    %c0_2 = arith.constant 0 : index
    %c0_3 = arith.constant 0 : index
    %1 = vector.load %arg3[%c0_2, %c0_3] : memref<4x256xf32, #tpu.memory_space<vmem>>, vector<4x256xf32>
    %2 = vector.shape_cast %1 : vector<4x256xf32> to vector<1x4x256xf32>
    %3 = arith.mulf %0, %2 : vector<1x4x256xf32>
    %cst = arith.constant dense<0.000000e+00> : vector<1x4xf32>
    %4 = vector.multi_reduction <add>, %3, %cst [2] : vector<1x4x256xf32> to vector<1x4xf32>
    %5 = vector.shape_cast %4 : vector<1x4xf32> to vector<1x4x1xf32>
    %c0_4 = arith.constant 0 : index
    %c0_5 = arith.constant 0 : index
    %6 = vector.load %arg4[%c0_4, %c0_5] : memref<4x1xf32, #tpu.memory_space<vmem>>, vector<4x1xf32>
    %7 = vector.shape_cast %6 : vector<4x1xf32> to vector<1x4x1xf32>
    %8 = arith.addf %5, %7 : vector<1x4x1xf32>
    %9 = arith.negf %8 : vector<1x4x1xf32>
    %10 = math.exp %9 : vector<1x4x1xf32>
    %cst_6 = arith.constant 1.000000e+00 : f32
    %11 = vector.broadcast %cst_6 : f32 to vector<1x4x1xf32>
    %12 = arith.addf %11, %10 : vector<1x4x1xf32>
    %13 = arith.divf %11, %12 : vector<1x4x1xf32>
    %14 = vector.broadcast %13 : vector<1x4x1xf32> to vector<1x4x256xf32>
    %15 = arith.mulf %0, %14 : vector<1x4x256xf32>
    %c0_7 = arith.constant 0 : index
    %c0_8 = arith.constant 0 : index
    %c0_9 = arith.constant 0 : index
    %16 = vector.load %arg5[%c0_7, %c0_8, %c0_9] : memref<1x4x256xf32, #tpu.memory_space<vmem>>, vector<1x4x256xf32>
    tpu.vector_store %arg5[%c0_7, %c0_8, %c0_9], %15 {strides = array<i32>} : memref<1x4x256xf32, #tpu.memory_space<vmem>>, vector<1x4x256xf32>,
    return
  }
  func.func @transform_0(%arg0: i32, %arg1: i32) -> (i32, i32, i32) {
    %c0_i32 = arith.constant 0 : i32
    %c0_i32_0 = arith.constant 0 : i32
    return %arg1, %arg0, %c0_i32 : i32, i32, i32
  }
  func.func @transform_1(%arg0: i32, %arg1: i32) -> (i32, i32) {
    %c0_i32 = arith.constant 0 : i32
    %c0_i32_0 = arith.constant 0 : i32
    return %arg0, %c0_i32 : i32, i32
  }
  func.func @transform_2(%arg0: i32, %arg1: i32) -> (i32, i32) {
    %c0_i32 = arith.constant 0 : i32
    %c0_i32_0 = arith.constant 0 : i32
    return %arg0, %c0_i32 : i32, i32
  }
  func.func @transform_3(%arg0: i32, %arg1: i32) -> (i32, i32, i32) {
    %c0_i32 = arith.constant 0 : i32
    %c0_i32_0 = arith.constant 0 : i32
    return %arg1, %arg0, %c0_i32 : i32, i32, i32
  }
}

</mosaic_0001>

<bundles_post_ra>
// kernel: tpu_custom_call.1
= control target key start
LH: loop header
LB: loop body
LE: loop exit
PB: predicated region body
PF: predicated region fallthrough
CT: control target
= control target key end

     0   :  { %8 = vsyncpa [#allocation3], 0  ;;  %s816_s0 = inlined_call_operand.hbm [shape: f32[2,4,256], index: 0, kind: input, shape index: {}]   ;;  %s817_s1 = inlined_call_operand.vmem [shape: f32[4,256], index: 1, kind: input, shape index: {}]   ;;  %s818_s2 = inlined_call_operand.vmem [shape: f32[4,1], index: 2, kind: input, shape index: {}]   ;;  %s819_s3 = inlined_call_operand.hbm [shape: f32[2,4,256], index: 3, kind: output, shape index: {}]  }
   0x1   :  { %10 = vsyncpa [#allocation3 + $0x1], 0 }
   0x2   :  { %11 = vsyncpa [#allocation4], 0 }
   0x3   :  { %13 = vsyncpa [#allocation4 + $0x1], 0  ;;  %s634_s12 = smov 0   ;;  %s636_s13 = smov 0  }
   0x4   :  { %s638_s14 = smov 0   ;;  %s640_s15 = smov 0  }
   0x5   :  { %s642_s16 = smov 0   ;;  %s644_s17 = smov 0  }
   0x6 LB: > { %s407_s18 = sadd.s32 4294967295, %s608_s17   ;;  %s408_s19 = sadd.s32 4294967294, %s608_s17   ;;  %s608_s17 = sphi %s644_s17, %s19_s17   ;;  %s604_s16 = sphi %s642_s16, %s835_s16   ;;  %s600_s15 = sphi %s640_s15, %s834_s15   ;;  %s596_s14 = sphi %s638_s14, %s833_s14   ;;  %s592_s13 = sphi %s636_s13, %s832_s13   ;;  %s588_s12 = sphi %s634_s12, %s831_s12  }
   0x7   : > { %s28_s20 = sadd.s32 1, %s604_s16  ;;  %s40_s21 = sadd.s32 1, %s596_s14 }
   0x8   : > { %p29_p0 = scmp.ge.s32.totalorder %s28_s20, 2  ;;  %p47_p1 = scmp.ne.s32.totalorder %s596_s14, %s592_s13 }
   0x9   : > { %p48_p2 = scmp.eq.s32.totalorder %s608_s17, 0  ;;  %p53_p3 = scmp.ne.s32.totalorder %s592_s13, %s588_s12 }
   0xa   : > { %s837_s20 = smov (%p29_p0, %s28_s20), 0  ;;  %p54_p5 = scmp.eq.s32.totalorder %s407_s18, 0 }
   0xb   : > { %p675_p4 = por %p48_p2, %p47_p1  ;;  %s35_s23 = ssub.s32 %s604_s16, %s837_s20 }
   0xc   : > { %p131_p6 = scmp.eq.s32.totalorder %s407_s18, 1  ;;  %p38_p7 = scmp.eq.s32.totalorder %s35_s23, 0 }
   0xd   : > { %p681_p8 = por %p54_p5, %p53_p3  ;;  %p137_p10 = scmp.eq.s32.totalorder %s408_s19, 1 }
   0xe   : > { %p685_p9 = por %p131_p6, %p47_p1  ;;  %p439_p13 = scmp.lt.s32.totalorder %s608_s17, 2 }
   0xf   : > { %s690_s26 = scalar_select %p38_p7, %s596_s14, %s40_s21  }
  0x10   : > { %s823_s25 = scalar_select %p685_p9, 1, 0 }
  0x11   : > { %p692_p11 = por %p137_p10, %p53_p3  ;;  %s172_s28 = sand.u32 1, %s596_s14  }
  0x12   : > { %s413_s29 = sshll.u32 %s172_s28, 3  ;;  %s425_s30 = sshll.u32 %s604_s16, 7 }
  0x13   : > { %s824_s27 = scalar_select %p692_p11, 1, 0 }
  0x14   : > { %s703_s6 = scalar_lea.hbm %s816_s0, %s425_s30  ;;  %s176_s7 = scalar_lea.vmem [#allocation2], %s413_s29 }
  0x15   : > { %s186_s8 = sshll.u32 %s176_s7, 4  ;;  %p709_p0 = pnand %p439_p13, %p675_p4  ;;  %s705_s8 = int_to_ptr.vmem [resolvable:$true] %s186_s8 }
  0x16   : > { %s173_s10 = scalar_lea.sflag [#allocation3], %s172_s28  ;;  %s496_s11 = scalar_lea.hbm %s703_s6, 128 }
  0x17   : > { %p497_p3 = scmp.ne.s32.totalorder %s703_s6, %s496_s11  ;;  %p498_p5 = pneg %p709_p0 }
  0x18   : > { %s501_s21 = scalar_lea.hbm %s816_s0, 256  ;;  %p502_p4 = scmp.lt.u32.totalorder %s703_s6, %s816_s0 }
  0x19   : > { %p499_p6 = pnand %p498_p5, %p497_p3  ;;  %p503_p10 = scmp.lt.u32.totalorder %s501_s21, %s496_s11 }
  0x1a   : > { %p505_p12 = scmp.lt.u32.totalorder %s496_s11, %s703_s6 }
  0x1b   : > { %p500_p7 = pneg %p499_p6  ;;  %p504_p13 = por %p503_p10, %p502_p4 }
  0x1d   : > { %p506_p1 = por %p505_p12, %p504_p13 }
  0x1f   : > { %p507_p2 = pnand %p506_p1, %p500_p7 }
  0x21   : > { %510 = shalt.err (!%p507_p2)
}
  0x22   : > { %s511_s28 = scalar_lea.vmem %s705_s8, 128  ;;  %s610_s29 = smov [#allocation2]  }
  0x23   : > { %p512_p3 = scmp.ne.s32.totalorder %s705_s8, %s511_s28  ;;  %s516_s30 = sshll.u32 %s610_s29, 4  ;;  %s517_s30 = int_to_ptr.vmem [resolvable:$false] %s516_s30 }
  0x24   : > { %s518_s4 = scalar_lea.vmem %s517_s30, 256  ;;  %p519_p9 = scmp.lt.s32.totalorder %s705_s8, %s517_s30 }
  0x25   : > { %p514_p6 = pnand %p512_p3, %p498_p5  ;;  %p520_p4 = scmp.lt.s32.totalorder %s518_s4, %s511_s28 }
  0x27   : > { %p515_p11 = pneg %p514_p6  ;;  %p521_p10 = por %p520_p4, %p519_p9 }
  0x29   : > { %p522_p12 = pnand %p521_p10, %p515_p11 }
  0x2b   : > { %525 = shalt.err (!%p522_p12)
}
  0x2c   : > { %434 = dma.hbm_to_vmem [thread:$0]  (!%p709_p0), %s703_s6, 128, %s705_s8, %s173_s10  }
  0x2d   : > { %p826_p1 = scmp.lt.s32.totalorder %s608_s17, 3  ;;  %p827_p2 = scmp.ge.s32.totalorder %s608_s17, 1 }
  0x2f   : > { %p192_p5 = pnand %p827_p2, %p826_p1 }
  0x30   : > { %s745_s5 = sand.u32 (!%p192_p5), 1, %s592_s13  }
  0x31   : > { %195 = sbr.rel (%p192_p5) target bundleno = 382 (0x17e), region = 32  ;;  %s417_s7 = sshll.u32 (!%p192_p5), %s745_s5, 3 }
  0x32   : > { %s198_s11 = scalar_lea.sflag (!%p192_p5), [#allocation3], %s745_s5  ;;  %s201_s9 = scalar_lea.vmem (!%p192_p5), [#allocation2], %s417_s7 }
  0x38   : > { %579 = dma.done.wait (%p681_p8), %s198_s11, 128  }
  0x39   : > { %581 = vsyncadd (%p681_p8), %s198_s11, 4294967168  ;;  %v242_v0 = vld [vmem:[%s201_s9] sm:$0xff]  ;;  %vm248_vm0 = vcmask 1043456   ;;  %v611_v7 = vmov 0   ;;  %v612_v15 = vmov 839922192   ;;  %v269_v17 = vlaneseq }
  0x3a   : > { %v243_v1 = vld [vmem:[%s817_s1] sm:$0xff]  ;;  %491 = vset.pattern.permute.xlu0 %v611_v7  ;;  %v267_v16 = vunpack.c.l.s4 %v612_v15  ;;  %s426_s24 = sshll.u32 %s600_s15, 7  ;;  %s232_s19 = scalar_lea.vmem [#allocation5], %s417_s7 }
  0x3b   : > { %v244_v2 = vmul.f32 %v243_v1, %v242_v0  ;;  %v254_v8 = vld [vmem:[%s818_s2] sm:$0xf]  ;;  %v270_v19 = vshrl.u32 %v269_v17, 7  ;;  %s293_s21 = sshll.u32 %s232_s19, 4  ;;  %s767_s28 = scalar_lea.hbm %s819_s3, %s426_s24  ;;  %s769_s21 = int_to_ptr.vmem [resolvable:$true] %s293_s21 }
  0x3c   : > { %v268_v18 = vunpack.c.0.s8 %v267_v16  ;;  %s277_s29 = scalar_lea.sflag [#allocation4], %s745_s5  ;;  %s526_s30 = scalar_lea.vmem %s769_s21, 128 }
  0x3d   : > { %v246_v3 = vcombine.high %v244_v2, %v244_v2  ;;  %v249_v4 = vsel %vm248_vm0, %v244_v2, 0.0  ;;  %p527_p8 = scmp.ne.s32.totalorder %s769_s21, %s526_s30  ;;  %p828_p9 = scmp.ne.s32.totalorder %s823_s25, 0 }
  0x3e   : > { %v271_v20 = vsub.s32 %v268_v18, %v270_v19  ;;  %s613_s15 = smov [#allocation5]  }
  0x3f   : > { %v250_v5 = vsel %vm248_vm0, %v246_v3, 0.0  ;;  %p528_p11 = pnand %p527_p8, %p828_p9  ;;  %s530_s4 = sshll.u32 %s613_s15, 4  ;;  %s531_s4 = int_to_ptr.vmem [resolvable:$false] %s530_s4 }
  0x40   : > { %v251_v6 = vadd.f32 %v250_v5, %v249_v4  ;;  %s532_s7 = scalar_lea.vmem %s531_s4, 256  ;;  %p533_p7 = scmp.lt.s32.totalorder %s769_s21, %s531_s4 }
  0x41   : > { %p529_p0 = pneg %p528_p11  ;;  %p534_p13 = scmp.lt.s32.totalorder %s532_s7, %s526_s30 }
  0x42   : > { %252 = vadd.xlane.f32.xlu0 %v251_v6 }
  0x43   : > { %p535_p3 = por %p534_p13, %p533_p7 }
  0x45   : > { %p536_p6 = pnand %p535_p3, %p529_p0 }
  0xcf   : > { %v253_v9 = vpop.xlane.xlu0 %252 }
  0xd0   : > { %v255_v10 = vadd.f32 %v254_v8, %v253_v9 }
  0xd2   : > { %v419_v11 = vmul.f32 -1.442695, %v255_v10 }
  0xd4   : > { %492 = vpow2.f32 %v419_v11 }
  0xde   : > { %v493_v12 = vpop.eup %492 }
  0xdf   : > { %v259_v13 = vadd.f32 1.0, %v493_v12 }
  0xe1   : > { %494 = vrcp.f32 %v259_v13 }
  0xeb   : > { %v495_v14 = vpop.eup %494 }
  0xec   : > { %264 = vperm.xlu0 %491, %v495_v14  }
 0x16b   : > { %v265_v21 = vpop.permute.xlu0 %264 }
 0x16c   : > { %v272_v22 = vrot.slane %v265_v21, %v271_v20 }
 0x16e   : > { %v274_v23 = vmul.f32 %v272_v22, %v242_v0 }
 0x170   : > { %275 = vst [vmem:[%s232_s19] sm:$0xff] %v274_v23 }
 0x171   : > { %539 = shalt.err (!%p536_p6)
}
 0x172   : > { %s540_s5 = scalar_lea.hbm %s767_s28, 128  ;;  %s544_s6 = scalar_lea.hbm %s819_s3, 256 }
 0x173   : > { %p541_p4 = scmp.ne.s32.totalorder %s767_s28, %s540_s5  ;;  %p545_p1 = scmp.lt.u32.totalorder %s767_s28, %s819_s3 }
 0x174   : > { %p546_p2 = scmp.lt.u32.totalorder %s544_s6, %s540_s5  ;;  %p548_p8 = scmp.lt.u32.totalorder %s540_s5, %s767_s28 }
 0x175   : > { %p542_p10 = pnand %p541_p4, %p828_p9 }
 0x176   : > { %p547_p5 = por %p546_p2, %p545_p1 }
 0x177   : > { %p543_p12 = pneg %p542_p10 }
 0x178   : > { %p549_p11 = por %p548_p8, %p547_p5 }
 0x17a   : > { %p550_p0 = pnand %p549_p11, %p543_p12 }
 0x17c   : > { %553 = shalt.err (!%p550_p0)
}
 0x17d   : > { %429 = dma.vmem_to_hbm [thread:$0]  (%p828_p9), %s769_s21, 128, %s767_s28, %s277_s29  }
 0x17e PF: > { %s305_s18 = sand.u32 1, %s588_s12   ;;  %p829_p7 = scmp.ne.s32.totalorder %s824_s27, 0 }
 0x17f   : > { %p830_p13 = scmp.ge.s32.totalorder %s608_s17, 2  ;;  %s306_s24 = scalar_lea.sflag [#allocation4], %s305_s18 }
 0x181   : > { %p436_p3 = pnand %p830_p13, %p829_p7 }
 0x183   : > { %583 = dma.done.wait (!%p436_p3), %s306_s24, 128  }
 0x184   : > { %585 = vsyncadd (!%p436_p3), %s306_s24, 4294967168  ;;  %s19_s17 = sadd.s32 1, %s608_s17   ;;  %s831_s12 = smov %s592_s13 }
 0x185   : > { %p16_p6 = scmp.ge.s32.totalorder %s19_s17, 4   ;;  %s832_s13 = smov %s596_s14 }
 0x186   : > { %s833_s14 = smov %s690_s26  ;;  %s834_s15 = smov %s604_s16 }
 0x187   : > { %s835_s16 = smov %s837_s20  ;;  %18 = sbr.rel (!%p16_p6) target bundleno = 6 (0x6), region = 83 }
 0x18e   :  { %311 = vsyncpa [#allocation3], 1 }
 0x18f   :  { %313 = vsyncpa [#allocation3 + $0x1], 1 }
 0x190   :  { %314 = vsyncpa [#allocation4], 1 }
 0x191   :  { %316 = vsyncpa [#allocation4 + $0x1], 1 }

</bundles_post_ra>
